<compile_context>
chip_gen: v6e
topology: v6e:2x2x1
jax: 0.10.0
libtpu: 0.0.40
codegen_flags: <defaults>
</compile_context>

<pallas_src>
import jax
import jax.numpy as jnp
from jax.experimental import pallas as pl
from jax.experimental.pallas import tpu as pltpu


def deepset_kernel(n_ref, w1a_ref, w1b_ref, b1a_ref, b1b_ref,
                   scale_ref, shift_ref, w2_ref, b2_ref, out_ref):
    """One grid step processes G graphs.

    n_ref:     (G, S, d_in)   node features of this block of graphs
    w1a_ref:   (d_in, d_in)   GLU linear weight, "value" half  (x @ W layout)
    w1b_ref:   (d_in, d_in)   GLU linear weight, "gate" half
    b1a_ref:   (1, d_in)      GLU bias, value half
    b1b_ref:   (1, d_in)      GLU bias, gate half
    scale_ref: (1, d_in)      folded BatchNorm scale = gamma / sqrt(var + eps)
    shift_ref: (1, d_in)      folded BatchNorm shift = beta - mean * scale
    w2_ref:    (d_in, d_out)  agg linear weight
    b2_ref:    (1, d_out)     agg linear bias
    out_ref:   (G, d_out)
    """
    G, S, d_in = n_ref.shape
    x = n_ref[...].reshape(G * S, d_in)                              # (G*S, d_in)

    # --- glu: Linear(d_in, 2*d_in) then GLU(dim=-1) -> a * sigmoid(g) ---
    # (weights pre-split -> both matmul outputs are lane-aligned, no mid-tile slice)
    a = jnp.dot(x, w1a_ref[...], preferred_element_type=jnp.float32) + b1a_ref[...]
    g = jnp.dot(x, w1b_ref[...], preferred_element_type=jnp.float32) + b1b_ref[...]
    glu = a * jax.nn.sigmoid(g)                                      # (G*S, d_in)

    # --- dgl.readout_nodes(op='sum'): per-graph sum over the S node rows ---
    # TODO(synk): for ragged DGL batches (graphs with < S real nodes) a per-graph
    #             node-count mask is needed; padded rows contribute b1a*sigmoid(b1b).
    readout = jnp.sum(glu.reshape(G, S, d_in), axis=1)               # (G, d_in)

    # --- agg: BatchNorm1d (eval mode, folded) + Dropout (eval => identity) ---
    # TODO(synk): training-mode BatchNorm batch statistics and stochastic Dropout
    #             are not reproduced (inference-mode semantics here).
    normed = readout * scale_ref[...] + shift_ref[...]               # (G, d_in)

    # --- agg: Linear(d_in, d_out), batched over the G graphs of this block ---
    out = jnp.dot(normed, w2_ref[...], preferred_element_type=jnp.float32) + b2_ref[...]
    out_ref[...] = out.astype(out_ref.dtype)                         # (G, d_out)


def _choose_graphs_per_block(B, S):
    """Pick G so G*S rows fill the MXU (~256) and the out block stays sublane-aligned."""
    g = max(1, pl.cdiv(256, S))
    if g >= B:
        return B                       # single block covering the full (padded) batch
    g = ((g + 7) // 8) * 8             # multiple-of-8 sublane block when grid > 1
    return min(g, B)


def deepset_forward(n, params, eps=1e-5, graphs_per_block=None):
    """n: [B, S, d_in] float32.  Returns [B, d_out]."""
    B, S, d_in = n.shape
    w1, b1, gamma, beta, rmean, rvar, w2, b2 = (
        params["w1"], params["b1"], params["gamma"], params["beta"],
        params["rmean"], params["rvar"], params["w2"], params["b2"])
    d_out = w2.shape[1]

    G = graphs_per_block if graphs_per_block is not None else _choose_graphs_per_block(B, S)
    B_pad = pl.cdiv(B, G) * G
    n_p = jnp.pad(n, ((0, B_pad - B), (0, 0), (0, 0))) if B_pad != B else n

    # Fold BatchNorm1d (eval) into per-feature scale/shift; pre-split GLU weight/bias
    # (plain-JAX glue, constant-folded under jit).
    inv_std = 1.0 / jnp.sqrt(rvar + eps)
    scale = (gamma * inv_std).reshape(1, d_in)
    shift = (beta - rmean * gamma * inv_std).reshape(1, d_in)
    w1a, w1b = w1[:, :d_in], w1[:, d_in:]
    b1a, b1b = b1[:d_in].reshape(1, d_in), b1[d_in:].reshape(1, d_in)
    b2_2d = b2.reshape(1, d_out)

    itemsize = jnp.dtype(n.dtype).itemsize
    cost = pl.CostEstimate(
        flops=2 * B_pad * S * d_in * (2 * d_in) + 2 * B_pad * d_in * d_out,
        transcendentals=B_pad * S * d_in,
        bytes_accessed=(n_p.size + w1.size + b1.size + 2 * d_in + w2.size + d_out
                        + B_pad * d_out) * itemsize,
    )

    out = pl.pallas_call(
        deepset_kernel,
        out_shape=jax.ShapeDtypeStruct((B_pad, d_out), n.dtype),
        grid=(B_pad // G,),
        in_specs=[
            pl.BlockSpec((G, S, d_in), lambda b: (b, 0, 0)),       # nodes of G graphs
            pl.BlockSpec((d_in, d_in), lambda b: (0, 0)),          # glu weight (value)
            pl.BlockSpec((d_in, d_in), lambda b: (0, 0)),          # glu weight (gate)
            pl.BlockSpec((1, d_in), lambda b: (0, 0)),             # glu bias (value)
            pl.BlockSpec((1, d_in), lambda b: (0, 0)),             # glu bias (gate)
            pl.BlockSpec((1, d_in), lambda b: (0, 0)),             # bn scale
            pl.BlockSpec((1, d_in), lambda b: (0, 0)),             # bn shift
            pl.BlockSpec((d_in, d_out), lambda b: (0, 0)),         # agg weight
            pl.BlockSpec((1, d_out), lambda b: (0, 0)),            # agg bias
        ],
        out_specs=pl.BlockSpec((G, d_out), lambda b: (b, 0)),      # lane/sublane-dense slab
        compiler_params=pltpu.CompilerParams(
            dimension_semantics=("parallel",)),
        cost_estimate=cost,
    )(n_p, w1a, w1b, b1a, b1b, scale, shift, w2, b2_2d)
    return out[:B]


def deepset_reference(n, params, eps=1e-5):
    """Pure-JAX reference of the same forward (eval-mode) semantics."""
    w1, b1, gamma, beta, rmean, rvar, w2, b2 = (
        params["w1"], params["b1"], params["gamma"], params["beta"],
        params["rmean"], params["rvar"], params["w2"], params["b2"])
    d_in = n.shape[-1]
    hp = jax.lax.Precision.HIGHEST
    h = jnp.einsum("bsd,de->bse", n, w1, precision=hp) + b1
    glu = h[..., :d_in] * jax.nn.sigmoid(h[..., d_in:])
    readout = jnp.sum(glu, axis=1)                                   # (B, d_in)
    normed = (readout - rmean) / jnp.sqrt(rvar + eps) * gamma + beta
    return jnp.einsum("bd,de->be", normed, w2, precision=hp) + b2


def init_params(key, d_in, d_out):
    ks = jax.random.split(key, 6)
    bound1 = 1.0 / jnp.sqrt(d_in)
    w1 = jax.random.uniform(ks[0], (d_in, 2 * d_in), jnp.float32, -bound1, bound1)
    b1 = jax.random.uniform(ks[1], (2 * d_in,), jnp.float32, -bound1, bound1)
    w2 = jax.random.uniform(ks[2], (d_in, d_out), jnp.float32, -bound1, bound1)
    b2 = jax.random.uniform(ks[3], (d_out,), jnp.float32, -bound1, bound1)
    gamma = jnp.ones((d_in,), jnp.float32)
    beta = jnp.zeros((d_in,), jnp.float32)
    # deterministic non-trivial running stats
    rmean = 0.1 * jax.random.normal(ks[4], (d_in,), jnp.float32)
    rvar = 1.0 + 0.1 * jax.random.uniform(ks[5], (d_in,), jnp.float32)
    return dict(w1=w1, b1=b1, gamma=gamma, beta=beta,
                rmean=rmean, rvar=rvar, w2=w2, b2=b2)


if __name__ == "__main__":
    B, S, d_in, d_out = 2, 8, 32, 16   # 2 graphs, 8 nodes each, d_in=32, d_out=16

    key = jax.random.PRNGKey(0)
    k_n, k_p = jax.random.split(key)
    n = jax.random.normal(k_n, (B, S, d_in), jnp.float32)
    params = init_params(k_p, d_in, d_out)

    out = deepset_forward(n, params)
    out = jax.block_until_ready(out)

    ref = deepset_reference(n, params)
    assert out.shape == (B, d_out)
    assert jnp.allclose(out, ref, atol=5e-3, rtol=5e-3), "mismatch vs reference"

    print("KERNEL_OK")
</pallas_src>

<mosaic_0001>
module attributes {stable_mosaic.version = 11 : i64} {
  func.func @deepset_kernel(%arg0: i32, %arg1: memref<2x8x32xf32, #tpu.memory_space<vmem>>, %arg2: memref<32x32xf32, #tpu.memory_space<vmem>>, %arg3: memref<32x32xf32, #tpu.memory_space<vmem>>, %arg4: memref<1x32xf32, #tpu.memory_space<vmem>>, %arg5: memref<1x32xf32, #tpu.memory_space<vmem>>, %arg6: memref<1x32xf32, #tpu.memory_space<vmem>>, %arg7: memref<1x32xf32, #tpu.memory_space<vmem>>, %arg8: memref<32x16xf32, #tpu.memory_space<vmem>>, %arg9: memref<1x16xf32, #tpu.memory_space<vmem>>, %arg10: memref<2x16xf32, #tpu.memory_space<vmem>>) attributes {dimension_semantics = [#tpu.dimension_semantics<parallel>], iteration_bounds = array<i64: 1>, scalar_prefetch = 0 : i64, scratch_operands = 0 : i64, tpu.core_type = #tpu.core_type<tc>, window_params = [{transform_indices = @transform_0, window_bounds = array<i64: 2, 8, 32>}, {pipeline_mode = #tpu.pipeline_mode<synchronous>, transform_indices = @transform_1, window_bounds = array<i64: 32, 32>}, {pipeline_mode = #tpu.pipeline_mode<synchronous>, transform_indices = @transform_2, window_bounds = array<i64: 32, 32>}, {pipeline_mode = #tpu.pipeline_mode<synchronous>, transform_indices = @transform_3, window_bounds = array<i64: 1, 32>}, {pipeline_mode = #tpu.pipeline_mode<synchronous>, transform_indices = @transform_4, window_bounds = array<i64: 1, 32>}, {pipeline_mode = #tpu.pipeline_mode<synchronous>, transform_indices = @transform_5, window_bounds = array<i64: 1, 32>}, {pipeline_mode = #tpu.pipeline_mode<synchronous>, transform_indices = @transform_6, window_bounds = array<i64: 1, 32>}, {pipeline_mode = #tpu.pipeline_mode<synchronous>, transform_indices = @transform_7, window_bounds = array<i64: 32, 16>}, {pipeline_mode = #tpu.pipeline_mode<synchronous>, transform_indices = @transform_8, window_bounds = array<i64: 1, 16>}, {transform_indices = @transform_9, window_bounds = array<i64: 2, 16>}]} {
    %c0 = arith.constant 0 : index
    %c0_0 = arith.constant 0 : index
    %c0_1 = arith.constant 0 : index
    %0 = vector.load %arg1[%c0, %c0_0, %c0_1] : memref<2x8x32xf32, #tpu.memory_space<vmem>>, vector<2x8x32xf32>
    %1 = vector.shape_cast %0 : vector<2x8x32xf32> to vector<16x32xf32>
    %c0_2 = arith.constant 0 : index
    %c0_3 = arith.constant 0 : index
    %2 = vector.load %arg2[%c0_2, %c0_3] : memref<32x32xf32, #tpu.memory_space<vmem>>, vector<32x32xf32>
    %cst = arith.constant dense<0.000000e+00> : vector<16x32xf32>
    %3 = tpu.matmul %1, %2, %cst {dimension_numbers = #tpu.dot_dimension_numbers<[1], [0], [0], [1], [0, 0, 1, 1], [], []>} : vector<16x32xf32>, vector<32x32xf32>, vector<16x32xf32> -> vector<16x32xf32>
    %c0_4 = arith.constant 0 : index
    %c0_5 = arith.constant 0 : index
    %4 = vector.load %arg4[%c0_4, %c0_5] : memref<1x32xf32, #tpu.memory_space<vmem>>, vector<1x32xf32>
    %5 = vector.broadcast %4 : vector<1x32xf32> to vector<16x32xf32>
    %6 = arith.addf %3, %5 : vector<16x32xf32>
    %c0_6 = arith.constant 0 : index
    %c0_7 = arith.constant 0 : index
    %7 = vector.load %arg3[%c0_6, %c0_7] : memref<32x32xf32, #tpu.memory_space<vmem>>, vector<32x32xf32>
    %cst_8 = arith.constant dense<0.000000e+00> : vector<16x32xf32>
    %8 = tpu.matmul %1, %7, %cst_8 {dimension_numbers = #tpu.dot_dimension_numbers<[1], [0], [0], [1], [0, 0, 1, 1], [], []>} : vector<16x32xf32>, vector<32x32xf32>, vector<16x32xf32> -> vector<16x32xf32>
    %c0_9 = arith.constant 0 : index
    %c0_10 = arith.constant 0 : index
    %9 = vector.load %arg5[%c0_9, %c0_10] : memref<1x32xf32, #tpu.memory_space<vmem>>, vector<1x32xf32>
    %10 = vector.broadcast %9 : vector<1x32xf32> to vector<16x32xf32>
    %11 = arith.addf %8, %10 : vector<16x32xf32>
    %12 = arith.negf %11 : vector<16x32xf32>
    %13 = math.exp %12 : vector<16x32xf32>
    %cst_11 = arith.constant 1.000000e+00 : f32
    %14 = vector.broadcast %cst_11 : f32 to vector<16x32xf32>
    %15 = arith.addf %14, %13 : vector<16x32xf32>
    %16 = arith.divf %14, %15 : vector<16x32xf32>
    %17 = arith.mulf %6, %16 : vector<16x32xf32>
    %18 = vector.shape_cast %17 : vector<16x32xf32> to vector<2x8x32xf32>
    %cst_12 = arith.constant dense<0.000000e+00> : vector<2x32xf32>
    %19 = vector.multi_reduction <add>, %18, %cst_12 [1] : vector<2x8x32xf32> to vector<2x32xf32>
    %c0_13 = arith.constant 0 : index
    %c0_14 = arith.constant 0 : index
    %20 = vector.load %arg6[%c0_13, %c0_14] : memref<1x32xf32, #tpu.memory_space<vmem>>, vector<1x32xf32>
    %21 = vector.broadcast %20 : vector<1x32xf32> to vector<2x32xf32>
    %22 = arith.mulf %19, %21 : vector<2x32xf32>
    %c0_15 = arith.constant 0 : index
    %c0_16 = arith.constant 0 : index
    %23 = vector.load %arg7[%c0_15, %c0_16] : memref<1x32xf32, #tpu.memory_space<vmem>>, vector<1x32xf32>
    %24 = vector.broadcast %23 : vector<1x32xf32> to vector<2x32xf32>
    %25 = arith.addf %22, %24 : vector<2x32xf32>
    %c0_17 = arith.constant 0 : index
    %c0_18 = arith.constant 0 : index
    %26 = vector.load %arg8[%c0_17, %c0_18] : memref<32x16xf32, #tpu.memory_space<vmem>>, vector<32x16xf32>
    %cst_19 = arith.constant dense<0.000000e+00> : vector<2x16xf32>
    %27 = tpu.matmul %25, %26, %cst_19 {dimension_numbers = #tpu.dot_dimension_numbers<[1], [0], [0], [1], [0, 0, 1, 1], [], []>} : vector<2x32xf32>, vector<32x16xf32>, vector<2x16xf32> -> vector<2x16xf32>
    %c0_20 = arith.constant 0 : index
    %c0_21 = arith.constant 0 : index
    %28 = vector.load %arg9[%c0_20, %c0_21] : memref<1x16xf32, #tpu.memory_space<vmem>>, vector<1x16xf32>
    %29 = vector.broadcast %28 : vector<1x16xf32> to vector<2x16xf32>
    %30 = arith.addf %27, %29 : vector<2x16xf32>
    %c0_22 = arith.constant 0 : index
    %c0_23 = arith.constant 0 : index
    %31 = vector.load %arg10[%c0_22, %c0_23] : memref<2x16xf32, #tpu.memory_space<vmem>>, vector<2x16xf32>
    tpu.vector_store %arg10[%c0_22, %c0_23], %30 {strides = array<i32>} : memref<2x16xf32, #tpu.memory_space<vmem>>, vector<2x16xf32>,
    return
  }
  func.func @transform_0(%arg0: i32) -> (i32, i32, i32) {
    %c0_i32 = arith.constant 0 : i32
    %c0_i32_0 = arith.constant 0 : i32
    %c0_i32_1 = arith.constant 0 : i32
    return %arg0, %c0_i32, %c0_i32_0 : i32, i32, i32
  }
  func.func @transform_1(%arg0: i32) -> (i32, i32) {
    %c0_i32 = arith.constant 0 : i32
    %c0_i32_0 = arith.constant 0 : i32
    %c0_i32_1 = arith.constant 0 : i32
    return %c0_i32, %c0_i32_0 : i32, i32
  }
  func.func @transform_2(%arg0: i32) -> (i32, i32) {
    %c0_i32 = arith.constant 0 : i32
    %c0_i32_0 = arith.constant 0 : i32
    %c0_i32_1 = arith.constant 0 : i32
    return %c0_i32, %c0_i32_0 : i32, i32
  }
  func.func @transform_3(%arg0: i32) -> (i32, i32) {
    %c0_i32 = arith.constant 0 : i32
    %c0_i32_0 = arith.constant 0 : i32
    %c0_i32_1 = arith.constant 0 : i32
    return %c0_i32, %c0_i32_0 : i32, i32
  }
  func.func @transform_4(%arg0: i32) -> (i32, i32) {
    %c0_i32 = arith.constant 0 : i32
    %c0_i32_0 = arith.constant 0 : i32
    %c0_i32_1 = arith.constant 0 : i32
    return %c0_i32, %c0_i32_0 : i32, i32
  }
  func.func @transform_5(%arg0: i32) -> (i32, i32) {
    %c0_i32 = arith.constant 0 : i32
    %c0_i32_0 = arith.constant 0 : i32
    %c0_i32_1 = arith.constant 0 : i32
    return %c0_i32, %c0_i32_0 : i32, i32
  }
  func.func @transform_6(%arg0: i32) -> (i32, i32) {
    %c0_i32 = arith.constant 0 : i32
    %c0_i32_0 = arith.constant 0 : i32
    %c0_i32_1 = arith.constant 0 : i32
    return %c0_i32, %c0_i32_0 : i32, i32
  }
  func.func @transform_7(%arg0: i32) -> (i32, i32) {
    %c0_i32 = arith.constant 0 : i32
    %c0_i32_0 = arith.constant 0 : i32
    %c0_i32_1 = arith.constant 0 : i32
    return %c0_i32, %c0_i32_0 : i32, i32
  }
  func.func @transform_8(%arg0: i32) -> (i32, i32) {
    %c0_i32 = arith.constant 0 : i32
    %c0_i32_0 = arith.constant 0 : i32
    %c0_i32_1 = arith.constant 0 : i32
    return %c0_i32, %c0_i32_0 : i32, i32
  }
  func.func @transform_9(%arg0: i32) -> (i32, i32) {
    %c0_i32 = arith.constant 0 : i32
    %c0_i32_0 = arith.constant 0 : i32
    return %arg0, %c0_i32 : i32, i32
  }
}

</mosaic_0001>

<bundles_post_ra>
// kernel: tpu_custom_call.1
= control target key start
LH: loop header
LB: loop body
LE: loop exit
PB: predicated region body
PF: predicated region fallthrough
CT: control target
= control target key end

     0   :  { %14 = vsyncpa [#allocation3], 0  ;;  %s613_s0 = inlined_call_operand.vmem [shape: f32[2,8,32], index: 0, kind: input, shape index: {}]   ;;  %s614_s1 = inlined_call_operand.vmem [shape: f32[32,32], index: 1, kind: input, shape index: {}]   ;;  %s615_s2 = inlined_call_operand.hbm [shape: f32[32,32], index: 2, kind: input, shape index: {}]   ;;  %s616_s3 = inlined_call_operand.vmem [shape: f32[1,32], index: 3, kind: input, shape index: {}]   ;;  %s617_s4 = inlined_call_operand.vmem [shape: f32[1,32], index: 4, kind: input, shape index: {}]   ;;  %s618_s5 = inlined_call_operand.vmem [shape: f32[1,32], index: 5, kind: input, shape index: {}]   ;;  %s619_s6 = inlined_call_operand.vmem [shape: f32[1,32], index: 6, kind: input, shape index: {}]   ;;  %s620_s7 = inlined_call_operand.vmem [shape: f32[32,16], index: 7, kind: input, shape index: {}]   ;;  %s621_s8 = inlined_call_operand.vmem [shape: f32[1,16], index: 8, kind: input, shape index: {}]   ;;  %s622_s9 = inlined_call_operand.hbm [shape: f32[2,16], index: 9, kind: output, shape index: {}]  }
   0x1   :  { %15 = vsyncpa [#allocation4], 0  ;;  %s499_s30 = smov [#allocation2]  }
   0x2   :  { %s25_s10 = sshll.u32 %s499_s30, 4  ;;  %s26_s10 = int_to_ptr.vmem [resolvable:$true] %s25_s10 }
   0x3   :  { %s463_s11 = scalar_lea.vmem %s26_s10, 512  ;;  %p468_p1 = scmp.lt.s32.totalorder %s26_s10, %s26_s10 }
   0x4   :  { %p464_p0 = scmp.ne.s32.totalorder %s26_s10, %s463_s11  ;;  %p469_p2 = scmp.lt.s32.totalorder %s463_s11, %s463_s11 }
   0x6   :  { %p470_p3 = por %p469_p2, %p468_p1 }
   0x8   :  { %p471_p4 = pnand %p470_p3, %p464_p0 }
   0xa   :  { %474 = shalt.err (!%p471_p4)
}
   0xb   :  { %s500_s12 = smov 128   ;;  %s501_s13 = smov 8  }
   0xc   :  { %31 = dma.hbm_to_vmem [thread:$0]  %s615_s2, 512, %s26_s10, [#allocation3], %s500_s12, %s500_s12, %s501_s13  }
   0xd   :  { %495 = dma.done.wait [#allocation3], 512  }
   0xe   :  { %496 = vsyncadd [#allocation3], 4294966784  ;;  %vm60_vm0 = vcmask 261120   ;;  %v145_v0 = vld [vmem:[#allocation2 + $0x18] sm:$0xff]  ;;  %v144_v1 = vld [vmem:[#allocation2 + $0x10] sm:$0xff]  ;;  %v502_v10 = vmov 0.0  }
   0xf   :  { %419 = vmatprep.subr.mxu1 %v145_v0  ;;  %v47_v2 = vld [vmem:[%s613_s0] sm:$0xff]  ;;  %v143_v3 = vld [vmem:[#allocation2 + $0x8] sm:$0xff]  ;;  %v52_v4 = vld [vmem:[%s614_s1 + $0x18] sm:$0xff]  ;;  %vm503_vm1 = vmmov 0   ;;  %vm288_vm2 = vcmask 1041409   ;;  %vm362_vm3 = vcmask 123904  }
  0x10   :  { %420 = vmatpush3.msra.mxu1 %v145_v0  ;;  %427 = vmatprep.mubr.msk.f32.mxu1 %vm60_vm0, %v47_v2  ;;  %v51_v5 = vld [vmem:[%s614_s1 + $0x10] sm:$0xff]  ;;  %v142_v6 = vld [vmem:[#allocation2] sm:$0xff]  ;;  %v50_v7 = vld [vmem:[%s614_s1 + $0x8] sm:$0xff] }
  0x11   :  { %421 = vmatprep.subr.mxu1 %v144_v1  ;;  %408 = vmatprep.subr.mxu0 %v52_v4  ;;  %v48_v8 = vld [vmem:[%s613_s0 + $0x8] sm:$0xff]  ;;  %v49_v9 = vld [vmem:[%s614_s1] sm:$0xff]  ;;  %v277_v11 = vld [vmem:[%s620_s7 + $0x18] sm:$0xff] }
  0x12   :  { %422 = vmatpush3.msra.mxu1 %v144_v1  ;;  %409 = vmatpush3.msra.mxu0 %v52_v4  ;;  %v276_v12 = vld [vmem:[%s620_s7 + $0x10] sm:$0xff]  ;;  %v275_v13 = vld [vmem:[%s620_s7 + $0x8] sm:$0xff]  ;;  %v274_v14 = vld [vmem:[%s620_s7] sm:$0xff] }
  0x13   :  { %423 = vmatprep.subr.mxu1 %v143_v3  ;;  %410 = vmatprep.subr.mxu0 %v51_v5  ;;  %v382_v15 = vld [vmem:[%s617_s4] ss:$0 sm:$0xff] }
  0x14   :  { %424 = vmatpush3.msra.mxu1 %v143_v3  ;;  %411 = vmatpush3.msra.mxu0 %v51_v5  ;;  %v379_v27 = vld [vmem:[%s616_s3] ss:$0 sm:$0xff] }
  0x15   :  { %425 = vmatprep.subr.mxu1 %v142_v6  ;;  %412 = vmatprep.subr.mxu0 %v50_v7  ;;  %v387_v46 = vld [vmem:[%s618_s5] ss:$0 sm:$0xff]  ;;  %s504_s5 = smov [#allocation5]  }
  0x16   :  { %426 = vmatpush3.msra.mxu1 %v142_v6  ;;  %413 = vmatpush3.msra.mxu0 %v50_v7  ;;  %v388_v49 = vld [vmem:[%s619_s6] ss:$0 sm:$0xff]  ;;  %s370_s19 = sshll.u32 %s504_s5, 4  ;;  %s371_s19 = int_to_ptr.vmem [resolvable:$true] %s370_s19 }
  0x17   :  { %428 = vmatmul.mubr.msk.f32.vlgmr.msra.gmra.mxu1 %vm60_vm0, %v48_v8  ;;  %414 = vmatprep.subr.mxu0 %v49_v9  ;;  %v389_v57 = vld [vmem:[%s621_s8] ss:$0 sm:$0xff]  ;;  %s475_s6 = scalar_lea.vmem %s371_s19, 32  ;;  %p480_p6 = scmp.lt.s32.totalorder %s371_s19, %s371_s19 }
  0x18   :  { %415 = vmatpush3.msra.mxu0 %v49_v9  ;;  %416 = vmatprep.mubr.msk.f32.mxu0 %vm60_vm0, %v47_v2  ;;  %p476_p5 = scmp.ne.s32.totalorder %s371_s19, %s475_s6  ;;  %p481_p7 = scmp.lt.s32.totalorder %s475_s6, %s475_s6 }
  0x19   :  { %417 = vmatmul.mubr.msk.f32.vlgmr.msra.gmra.mxu0 %vm60_vm0, %v48_v8  ;;  %430 = vmatprep.subr.mxu0 %v502_v10 }
  0x1a   :  { %431 = vmatpush3.msra.mxu0 %v277_v11  ;;  %438 = vmatprep.mubr.msk.f32.mxu0 %vm503_vm1, %v502_v10  ;;  %p482_p8 = por %p481_p7, %p480_p6 }
  0x1b   :  { %432 = vmatprep.subr.mxu0 %v502_v10 }
  0x1c   :  { %433 = vmatpush3.msra.mxu0 %v276_v12  ;;  %p483_p9 = pnand %p482_p8, %p476_p5 }
  0x1d   :  { %434 = vmatprep.subr.mxu0 %v502_v10 }
  0x1e   :  { %435 = vmatpush3.msra.mxu0 %v275_v13 }
  0x1f   :  { %436 = vmatprep.subr.mxu0 %v502_v10 }
  0x20   :  { %437 = vmatpush3.msra.mxu0 %v274_v14 }
  0xd7   :  { %v429_v16 = vpop.f32.mrf.mxu1 }
  0xd8   :  { %v225_v17 = vadd.f32 %v429_v16, %v382_v15 }
  0xd9   :  { %v219_v18 = vpop.f32.mrf.mxu1  ;;  %v418_v26 = vpop.f32.mrf.mxu0 }
  0xda   :  { %v386_v19 = vmul.f32 -1.442695, %v225_v17  ;;  %v220_v20 = vadd.f32 %v382_v15, %v219_v18  ;;  %v139_v28 = vadd.f32 %v418_v26, %v379_v27 }
  0xdb   :  { %v133_v29 = vpop.f32.mrf.mxu0 }
  0xdc   :  { %447 = vpow2.f32 %v386_v19  ;;  %v385_v21 = vmul.f32 -1.442695, %v220_v20  ;;  %v134_v32 = vadd.f32 %v379_v27, %v133_v29 }
  0xde   :  { %449 = vpow2.f32 %v385_v21 }
  0xe9   :  { %v448_v22 = vpop.eup %447 }
  0xea   :  { %v235_v23 = vadd.f32 1.0, %v448_v22 }
  0xeb   :  { %v450_v24 = vpop.eup %449 }
  0xec   :  { %451 = vrcp.f32 %v235_v23  ;;  %v234_v25 = vadd.f32 1.0, %v450_v24 }
  0xee   :  { %453 = vrcp.f32 %v234_v25 }
  0xf9   :  { %v452_v30 = vpop.eup %451 }
  0xfa   :  { %v241_v31 = vmul.f32 %v452_v30, %v139_v28 }
  0xfb   :  { %v454_v33 = vpop.eup %453 }
  0xfc   :  { %v249_v34 = vsel %vm60_vm0, %v241_v31, 0.0  ;;  %v240_v35 = vmul.f32 %v454_v33, %v134_v32 }
  0xfd   :  { %v250_v36 = vrot.slane %v249_v34, 4 }
  0xfe   :  { %v242_v37 = vsel %vm60_vm0, %v240_v35, 0.0 }
  0xff   :  { %v251_v38 = vadd.f32 %v250_v36, %v249_v34  ;;  %v243_v39 = vrot.slane %v242_v37, 4 }
 0x101   :  { %v252_v40 = vrot.slane %v251_v38, 2  ;;  %v244_v41 = vadd.f32 %v243_v39, %v242_v37 }
 0x103   :  { %v253_v42 = vadd.f32 %v252_v40, %v251_v38  ;;  %v245_v43 = vrot.slane %v244_v41, 2 }
 0x105   :  { %v254_v44 = vrot.slane %v253_v42, 1  ;;  %v246_v45 = vadd.f32 %v245_v43, %v244_v41 }
 0x107   :  { %v255_v47 = vadd.f32 %v254_v44, %v253_v42  ;;  %v247_v48 = vrot.slane %v246_v45, 1 }
 0x109   :  { %v264_v50 = vmul.f32 %v387_v46, %v255_v47  ;;  %v248_v51 = vadd.f32 %v247_v48, %v246_v45 }
 0x10b   :  { %v263_v52 = vmul.f32 %v387_v46, %v248_v51  ;;  %v273_v53 = vadd.f32 %v388_v49, %v264_v50 }
 0x10d   :  { %v272_v54 = vadd.f32 %v388_v49, %v263_v52  ;;  %v287_v55 = vrot.slane %v273_v53, 7 }
 0x10f   :  { %v289_v56 = vsel %vm288_vm2, %v287_v55, %v272_v54 }
 0x110   :  { %439 = vmatmul.mubr.msk.f32.vlgmr.msra.gmra.mxu0 %vm60_vm0, %v289_v56 }
 0x1d0   :  { %v358_v58 = vpop.f32.mrf.mxu0 }
 0x1d1   :  { %v359_v59 = vadd.f32 %v389_v57, %v358_v58 }
 0x1d2   :  { %v440_v60 = vpop.f32.mrf.mxu0 }
 0x1d3   :  { %363 = vst.msk [vmem:[#allocation5] sm:$0x3] %vm362_vm3, %v359_v59 }
 0x1d4   :  { %486 = shalt.err (!%p483_p9)
}
 0x1d5   :  { %373 = dma.vmem_to_hbm [thread:$0]  %s371_s19, 32, %s622_s9, [#allocation4]  }
 0x1d6   :  { %497 = dma.done.wait [#allocation4], 32  }
 0x1d7   :  { %498 = vsyncadd [#allocation4], 4294967264 }
 0x1d8   :  { %377 = vsyncpa [#allocation3], 1 }
 0x1d9   :  { %378 = vsyncpa [#allocation4], 1 }

</bundles_post_ra>
